<compile_context>
chip_gen: v5e
topology: v5e:2x2
jax: 0.10.0
libtpu: 0.0.40
codegen_flags: <defaults>
</compile_context>

<pallas_src>
import jax
import jax.numpy as jnp
from jax import lax
from jax.experimental import pallas as pl
from jax.experimental.pallas import tpu as pltpu


_NEG = -1e30  # large finite negative: exp underflows to 0 in the masked softmax, no NaN.


def _recip(x):
    """EUP approximate reciprocal refined with one Newton step (~f32 accuracy, no vdiv)."""
    r = pl.reciprocal(x, approx=True)
    return r * (2.0 - x * r)


# ---------------------------------------------------------------------------
# Fused kernel: LSTM over time (unrolled, gate-packed) + attention policy head
# ---------------------------------------------------------------------------
def policy_fused_kernel(x_ref,          # (T, Bp, D)   time-major padded state
                        w_ih_ref,       # (D, 4H)      packed input weights  (gate order i|f|g|o)
                        w_hh_ref,       # (H, 4H)      packed recurrent weights
                        b_ref,          # (1, 4H)      packed bias (b_ih + b_hh)
                        wa_t_ref, ba_ref, ae_t_ref,   # action_fc (H,E), (1,E); action emb (E,A)
                        wu_t_ref, bu_ref, ue_t_ref,   # unit_fc   (H,E), (1,E); unit emb  (E,U)
                        aum_ref,        # (A, U)       action_unit_mask (additive logits)
                        wc_t_ref, bc_ref,             # coord_fc  (H,2), (1,2)
                        aa_add_ref,     # (Bp, A)      additive availability mask (0 / -1e30)
                        au_add_ref,     # (Bp, U)      additive availability mask (0 / -1e30)
                        out_ref):       # (Bp, 128)    packed [a_probs | coords | unit_probs | 0]
    T, Bp, D = x_ref.shape
    H = w_hh_ref.shape[0]
    H4 = w_hh_ref.shape[1]
    A, U = aum_ref.shape

    # ---------------- LSTM base ----------------
    # Input-gate contributions for every timestep & gate in ONE lane-dense matmul.
    x2 = x_ref[...].reshape(T * Bp, D)                                        # free relabel
    xg = (jnp.dot(x2, w_ih_ref[...], preferred_element_type=jnp.float32)
          + b_ref[...]).reshape(T, Bp, H4)          # (T, Bp, 4H); xg[t] is a cheap leading index

    w_hh = w_hh_ref[...]                            # (H, 4H), hoisted out of the loop
    h = jnp.zeros((Bp, H), jnp.float32)
    c = jnp.zeros((Bp, H), jnp.float32)
    # Fully unrolled recurrence (T is a static Python int). Per step: one (Bp,H)x(H,4H) matmul,
    # two full-vreg EUP passes, static lane-group slices for the four gates.
    # TODO(synk): switch to lax.fori_loop(..., unroll=True) with VMEM-staged xg if T grows.
    for t in range(T):
        gates = xg[t] + jnp.dot(h, w_hh, preferred_element_type=jnp.float32)  # (Bp, 4H)
        sig = jax.nn.sigmoid(gates)                 # full-vreg pass (i/f/o lane groups used)
        th = jnp.tanh(gates)                        # full-vreg pass (g lane group used)
        i_g = sig[:, 0 * H:1 * H]
        f_g = sig[:, 1 * H:2 * H]
        g_g = th[:, 2 * H:3 * H]
        o_g = sig[:, 3 * H:4 * H]
        c = f_g * c + i_g * g_g
        h = o_g * jnp.tanh(c)

    # ---------------- policy head ----------------
    # action path: Linear(H->E), score vs action embeddings, masked softmax over A
    aq = jnp.dot(h, wa_t_ref[...], preferred_element_type=jnp.float32) + ba_ref[...]      # (Bp, E)
    a_s = jnp.dot(aq, ae_t_ref[...], preferred_element_type=jnp.float32) + aa_add_ref[...]  # (Bp, A)
    a_s = a_s - jnp.max(a_s, axis=-1, keepdims=True)
    a_e = jnp.exp(a_s)
    a_p = a_e * _recip(jnp.sum(a_e, axis=-1, keepdims=True))                               # (Bp, A)

    # unit path: Linear(H->E), score vs unit embeddings; availability mask applied once,
    # per-action additive action_unit_mask inside the (small, static) unrolled loop.
    uq = jnp.dot(h, wu_t_ref[...], preferred_element_type=jnp.float32) + bu_ref[...]       # (Bp, E)
    u_s = jnp.dot(uq, ue_t_ref[...], preferred_element_type=jnp.float32) + au_add_ref[...]  # (Bp, U)
    aum = aum_ref[...]                                                                      # (A, U)
    unit_pieces = []
    for a in range(A):
        m = u_s + aum[a:a + 1, :]
        m = m - jnp.max(m, axis=-1, keepdims=True)
        me = jnp.exp(m)
        unit_pieces.append(me * _recip(jnp.sum(me, axis=-1, keepdims=True)))                # (Bp, U)

    # coordinates: Linear(H->2)
    coords = jnp.dot(h, wc_t_ref[...], preferred_element_type=jnp.float32) + bc_ref[...]   # (Bp, 2)

    # ---------------- single full-width lane-dense store ----------------
    used = A + 2 + A * U
    pad = jnp.zeros((Bp, out_ref.shape[1] - used), jnp.float32)
    out_ref[...] = jnp.concatenate([a_p, coords] + unit_pieces + [pad], axis=-1)


# ---------------------------------------------------------------------------
# One-time parameter repacking (hoisted out of the hot path)
# ---------------------------------------------------------------------------
def prepare_params(params):
    """Repack PyTorch-layout weights into the kernel layout. Call ONCE, reuse every forward."""
    H = params["w_hh"].shape[1]
    f32 = jnp.float32
    return {
        "w_ih_packed": jnp.asarray(params["w_ih"], f32).T,                  # (D, 4H), gates i|f|g|o on lanes
        "w_hh_packed": jnp.asarray(params["w_hh"], f32).T,                  # (H, 4H)
        "b_packed": (params["b_ih"] + params["b_hh"]).astype(f32).reshape(1, 4 * H),
        "wa_t": jnp.asarray(params["w_action"], f32).T,                     # (H, E)
        "ba": jnp.asarray(params["b_action"], f32).reshape(1, -1),
        "ae_t": jnp.asarray(params["action_embedding"], f32).T,             # (E, A)
        "wu_t": jnp.asarray(params["w_unit"], f32).T,                       # (H, E)
        "bu": jnp.asarray(params["b_unit"], f32).reshape(1, -1),
        "ue_t": jnp.asarray(params["unit_embedding"], f32).T,               # (E, U)
        "aum": jnp.asarray(params["action_unit_mask"], f32),                # (A, U)
        "wc_t": jnp.asarray(params["w_coord"], f32).T,                      # (H, 2)
        "bc": jnp.asarray(params["b_coord"], f32).reshape(1, -1),
    }


# ---------------------------------------------------------------------------
# Jitted forward: only per-call data handling + the single fused pallas_call
# ---------------------------------------------------------------------------
@jax.jit
def policy_network_forward(prep, state, available_actions, available_units):
    B, T, D = state.shape
    H = prep["w_hh_packed"].shape[0]
    A, U = prep["aum"].shape

    # Pad batch to a full 8-row sublane group; padded rows get all-available (0) additive masks.
    SUB = 8
    Bp = ((B + SUB - 1) // SUB) * SUB
    state_p = jnp.zeros((Bp, T, D), jnp.float32).at[:B].set(state.astype(jnp.float32))
    x_tm = jnp.transpose(state_p, (1, 0, 2))                                # (T, Bp, D) time-major

    aa_add = jnp.zeros((Bp, A), jnp.float32).at[:B].set(
        jnp.where(available_actions.astype(bool), 0.0, _NEG).astype(jnp.float32))
    au_add = jnp.zeros((Bp, U), jnp.float32).at[:B].set(
        jnp.where(available_units.astype(bool), 0.0, _NEG).astype(jnp.float32))

    OUT_W = 128                                    # lane-dense packed output width
    used = A + 2 + A * U
    assert used <= OUT_W, "packed output does not fit one 128-lane slab"

    vmem = pl.BlockSpec(memory_space=pltpu.MemorySpace.VMEM)
    packed = pl.pallas_call(
        policy_fused_kernel,
        out_shape=jax.ShapeDtypeStruct((Bp, OUT_W), jnp.float32),
        in_specs=[vmem] * 15,
        out_specs=vmem,
    )(
        x_tm, prep["w_ih_packed"], prep["w_hh_packed"], prep["b_packed"],
        prep["wa_t"], prep["ba"], prep["ae_t"],
        prep["wu_t"], prep["bu"], prep["ue_t"],
        prep["aum"], prep["wc_t"], prep["bc"],
        aa_add, au_add,
    )

    packed = packed[:B]
    action_probs = packed[:, :A]
    coordinates = packed[:, A:A + 2]
    unit_probs = packed[:, A + 2:A + 2 + A * U].reshape(B, A, U)
    return {"action_probs": action_probs,
            "unit_probs": unit_probs,
            "coordinates": coordinates}


# ---------------------------------------------------------------------------
# Pure-JAX reference (for correctness check only)
# ---------------------------------------------------------------------------
def reference_forward(params, state, available_actions, available_units):
    H = params["w_hh"].shape[1]
    b = params["b_ih"] + params["b_hh"]

    def cell(carry, x_t):
        h, c = carry
        g = x_t @ params["w_ih"].T + h @ params["w_hh"].T + b
        i = jax.nn.sigmoid(g[:, 0:H])
        f = jax.nn.sigmoid(g[:, H:2 * H])
        gg = jnp.tanh(g[:, 2 * H:3 * H])
        o = jax.nn.sigmoid(g[:, 3 * H:4 * H])
        c = f * c + i * gg
        h = o * jnp.tanh(c)
        return (h, c), None

    B = state.shape[0]
    (h, _), _ = lax.scan(cell, (jnp.zeros((B, H)), jnp.zeros((B, H))),
                         jnp.swapaxes(state, 0, 1))

    aq = h @ params["w_action"].T + params["b_action"]
    a_scores = aq @ params["action_embedding"].T
    a_scores = jnp.where(available_actions, a_scores, -jnp.inf)
    action_probs = jax.nn.softmax(a_scores, axis=-1)

    uq = h @ params["w_unit"].T + params["b_unit"]
    u_scores = uq @ params["unit_embedding"].T
    masked = u_scores[:, None, :] + params["action_unit_mask"][None, :, :]
    masked = jnp.where(available_units[:, None, :], masked, -jnp.inf)
    unit_probs = jax.nn.softmax(masked, axis=-1)

    coords = h @ params["w_coord"].T + params["b_coord"]
    return {"action_probs": action_probs, "unit_probs": unit_probs, "coordinates": coords}


# ---------------------------------------------------------------------------
def init_params(key, input_dim, hidden, embed, num_actions, num_units):
    ks = jax.random.split(key, 12)
    s = 0.1
    return {
        # base LSTM (stand-in for base_network)
        "w_ih": s * jax.random.normal(ks[0], (4 * hidden, input_dim), jnp.float32),
        "w_hh": s * jax.random.normal(ks[1], (4 * hidden, hidden), jnp.float32),
        "b_ih": s * jax.random.normal(ks[2], (4 * hidden,), jnp.float32),
        "b_hh": s * jax.random.normal(ks[3], (4 * hidden,), jnp.float32),
        # PolicyNetwork head
        "w_action": s * jax.random.normal(ks[4], (embed, hidden), jnp.float32),
        "b_action": s * jax.random.normal(ks[5], (embed,), jnp.float32),
        "action_embedding": s * jax.random.normal(ks[6], (num_actions, embed), jnp.float32),
        "w_unit": s * jax.random.normal(ks[7], (embed, hidden), jnp.float32),
        "b_unit": s * jax.random.normal(ks[8], (embed,), jnp.float32),
        "unit_embedding": s * jax.random.normal(ks[9], (num_units, embed), jnp.float32),
        "action_unit_mask": jax.random.normal(ks[10], (num_actions, num_units), jnp.float32),
        "w_coord": s * jax.random.normal(ks[11], (2, hidden), jnp.float32),
        "b_coord": jnp.zeros((2,), jnp.float32),
    }


if __name__ == "__main__":
    B, T, D = 2, 8, 16          # batch, seq_len, input_dim
    H, E = 32, 32               # lstm_hidden_size, embedding_dim (4H = 128 -> lane-dense gates)
    A, U = 2, 16                # num_actions, num_units

    key = jax.random.PRNGKey(0)
    k_param, k_state, k_aa, k_au = jax.random.split(key, 4)

    params = init_params(k_param, D, H, E, A, U)
    prep = prepare_params(params)            # one-time weight repacking (outside the hot path)
    state = jax.random.normal(k_state, (B, T, D), jnp.float32)

    available_actions = jax.random.bernoulli(k_aa, 0.7, (B, A)).at[:, 0].set(True)
    available_units = jax.random.bernoulli(k_au, 0.7, (B, U)).at[:, 0].set(True)

    out = policy_network_forward(prep, state, available_actions, available_units)
    jax.block_until_ready(out)

    ref = reference_forward(params, state, available_actions, available_units)
    for k in ("action_probs", "unit_probs", "coordinates"):
        assert jnp.allclose(out[k], ref[k], atol=1e-4, rtol=1e-4), f"mismatch in {k}"
    assert jnp.allclose(jnp.sum(out["action_probs"], -1), 1.0, atol=1e-5)
    assert jnp.allclose(jnp.sum(out["unit_probs"], -1), 1.0, atol=1e-5)

    print("KERNEL_OK")
</pallas_src>

<mosaic_0001>
module attributes {stable_mosaic.version = 11 : i64} {
  func.func @policy_fused_kernel(%arg0: memref<8x8x16xf32, #tpu.memory_space<vmem>>, %arg1: memref<16x128xf32, #tpu.memory_space<vmem>>, %arg2: memref<32x128xf32, #tpu.memory_space<vmem>>, %arg3: memref<1x128xf32, #tpu.memory_space<vmem>>, %arg4: memref<32x32xf32, #tpu.memory_space<vmem>>, %arg5: memref<1x32xf32, #tpu.memory_space<vmem>>, %arg6: memref<32x2xf32, #tpu.memory_space<vmem>>, %arg7: memref<32x32xf32, #tpu.memory_space<vmem>>, %arg8: memref<1x32xf32, #tpu.memory_space<vmem>>, %arg9: memref<32x16xf32, #tpu.memory_space<vmem>>, %arg10: memref<2x16xf32, #tpu.memory_space<vmem>>, %arg11: memref<32x2xf32, #tpu.memory_space<vmem>>, %arg12: memref<1x2xf32, #tpu.memory_space<vmem>>, %arg13: memref<8x2xf32, #tpu.memory_space<vmem>>, %arg14: memref<8x16xf32, #tpu.memory_space<vmem>>, %arg15: memref<8x128xf32, #tpu.memory_space<vmem>>) attributes {dimension_semantics = [], scalar_prefetch = 0 : i64, scratch_operands = 0 : i64, tpu.core_type = #tpu.core_type<tc>} {
    %c0 = arith.constant 0 : index
    %c0_0 = arith.constant 0 : index
    %c0_1 = arith.constant 0 : index
    %0 = vector.load %arg0[%c0, %c0_0, %c0_1] : memref<8x8x16xf32, #tpu.memory_space<vmem>>, vector<8x8x16xf32>
    %1 = vector.shape_cast %0 : vector<8x8x16xf32> to vector<64x16xf32>
    %c0_2 = arith.constant 0 : index
    %c0_3 = arith.constant 0 : index
    %2 = vector.load %arg1[%c0_2, %c0_3] : memref<16x128xf32, #tpu.memory_space<vmem>>, vector<16x128xf32>
    %cst = arith.constant dense<0.000000e+00> : vector<64x128xf32>
    %3 = tpu.matmul %1, %2, %cst {dimension_numbers = #tpu.dot_dimension_numbers<[1], [0], [0], [1], [0, 0, 1, 1], [], []>} : vector<64x16xf32>, vector<16x128xf32>, vector<64x128xf32> -> vector<64x128xf32>
    %c0_4 = arith.constant 0 : index
    %c0_5 = arith.constant 0 : index
    %4 = vector.load %arg3[%c0_4, %c0_5] : memref<1x128xf32, #tpu.memory_space<vmem>>, vector<1x128xf32>
    %5 = vector.broadcast %4 : vector<1x128xf32> to vector<64x128xf32>
    %6 = arith.addf %3, %5 : vector<64x128xf32>
    %7 = vector.shape_cast %6 : vector<64x128xf32> to vector<8x8x128xf32>
    %c0_6 = arith.constant 0 : index
    %c0_7 = arith.constant 0 : index
    %8 = vector.load %arg2[%c0_6, %c0_7] : memref<32x128xf32, #tpu.memory_space<vmem>>, vector<32x128xf32>
    %cst_8 = arith.constant 0.000000e+00 : f32
    %9 = vector.broadcast %cst_8 : f32 to vector<8x32xf32>
    %cst_9 = arith.constant 0.000000e+00 : f32
    %10 = vector.broadcast %cst_9 : f32 to vector<8x32xf32>
    %11 = vector.extract_strided_slice %7 {offsets = [0, 0, 0], sizes = [1, 8, 128], strides = [1, 1, 1]} : vector<8x8x128xf32> to vector<1x8x128xf32>
    %12 = vector.shape_cast %11 : vector<1x8x128xf32> to vector<8x128xf32>
    %cst_10 = arith.constant dense<0.000000e+00> : vector<8x128xf32>
    %13 = tpu.matmul %9, %8, %cst_10 {dimension_numbers = #tpu.dot_dimension_numbers<[1], [0], [0], [1], [0, 0, 1, 1], [], []>} : vector<8x32xf32>, vector<32x128xf32>, vector<8x128xf32> -> vector<8x128xf32>
    %14 = arith.addf %12, %13 : vector<8x128xf32>
    %15 = arith.negf %14 : vector<8x128xf32>
    %16 = math.exp %15 : vector<8x128xf32>
    %cst_11 = arith.constant 1.000000e+00 : f32
    %17 = vector.broadcast %cst_11 : f32 to vector<8x128xf32>
    %18 = arith.addf %17, %16 : vector<8x128xf32>
    %19 = arith.divf %17, %18 : vector<8x128xf32>
    %20 = math.tanh %14 : vector<8x128xf32>
    %21 = vector.extract_strided_slice %19 {offsets = [0, 0], sizes = [8, 32], strides = [1, 1]} : vector<8x128xf32> to vector<8x32xf32>
    %22 = vector.extract_strided_slice %19 {offsets = [0, 32], sizes = [8, 32], strides = [1, 1]} : vector<8x128xf32> to vector<8x32xf32>
    %23 = vector.extract_strided_slice %20 {offsets = [0, 64], sizes = [8, 32], strides = [1, 1]} : vector<8x128xf32> to vector<8x32xf32>
    %24 = vector.extract_strided_slice %19 {offsets = [0, 96], sizes = [8, 32], strides = [1, 1]} : vector<8x128xf32> to vector<8x32xf32>
    %25 = arith.mulf %22, %10 : vector<8x32xf32>
    %26 = arith.mulf %21, %23 : vector<8x32xf32>
    %27 = arith.addf %25, %26 : vector<8x32xf32>
    %28 = math.tanh %27 : vector<8x32xf32>
    %29 = arith.mulf %24, %28 : vector<8x32xf32>
    %30 = vector.extract_strided_slice %7 {offsets = [1, 0, 0], sizes = [1, 8, 128], strides = [1, 1, 1]} : vector<8x8x128xf32> to vector<1x8x128xf32>
    %31 = vector.shape_cast %30 : vector<1x8x128xf32> to vector<8x128xf32>
    %cst_12 = arith.constant dense<0.000000e+00> : vector<8x128xf32>
    %32 = tpu.matmul %29, %8, %cst_12 {dimension_numbers = #tpu.dot_dimension_numbers<[1], [0], [0], [1], [0, 0, 1, 1], [], []>} : vector<8x32xf32>, vector<32x128xf32>, vector<8x128xf32> -> vector<8x128xf32>
    %33 = arith.addf %31, %32 : vector<8x128xf32>
    %34 = arith.negf %33 : vector<8x128xf32>
    %35 = math.exp %34 : vector<8x128xf32>
    %cst_13 = arith.constant 1.000000e+00 : f32
    %36 = vector.broadcast %cst_13 : f32 to vector<8x128xf32>
    %37 = arith.addf %36, %35 : vector<8x128xf32>
    %38 = arith.divf %36, %37 : vector<8x128xf32>
    %39 = math.tanh %33 : vector<8x128xf32>
    %40 = vector.extract_strided_slice %38 {offsets = [0, 0], sizes = [8, 32], strides = [1, 1]} : vector<8x128xf32> to vector<8x32xf32>
    %41 = vector.extract_strided_slice %38 {offsets = [0, 32], sizes = [8, 32], strides = [1, 1]} : vector<8x128xf32> to vector<8x32xf32>
    %42 = vector.extract_strided_slice %39 {offsets = [0, 64], sizes = [8, 32], strides = [1, 1]} : vector<8x128xf32> to vector<8x32xf32>
    %43 = vector.extract_strided_slice %38 {offsets = [0, 96], sizes = [8, 32], strides = [1, 1]} : vector<8x128xf32> to vector<8x32xf32>
    %44 = arith.mulf %41, %27 : vector<8x32xf32>
    %45 = arith.mulf %40, %42 : vector<8x32xf32>
    %46 = arith.addf %44, %45 : vector<8x32xf32>
    %47 = math.tanh %46 : vector<8x32xf32>
    %48 = arith.mulf %43, %47 : vector<8x32xf32>
    %49 = vector.extract_strided_slice %7 {offsets = [2, 0, 0], sizes = [1, 8, 128], strides = [1, 1, 1]} : vector<8x8x128xf32> to vector<1x8x128xf32>
    %50 = vector.shape_cast %49 : vector<1x8x128xf32> to vector<8x128xf32>
    %cst_14 = arith.constant dense<0.000000e+00> : vector<8x128xf32>
    %51 = tpu.matmul %48, %8, %cst_14 {dimension_numbers = #tpu.dot_dimension_numbers<[1], [0], [0], [1], [0, 0, 1, 1], [], []>} : vector<8x32xf32>, vector<32x128xf32>, vector<8x128xf32> -> vector<8x128xf32>
    %52 = arith.addf %50, %51 : vector<8x128xf32>
    %53 = arith.negf %52 : vector<8x128xf32>
    %54 = math.exp %53 : vector<8x128xf32>
    %cst_15 = arith.constant 1.000000e+00 : f32
    %55 = vector.broadcast %cst_15 : f32 to vector<8x128xf32>
    %56 = arith.addf %55, %54 : vector<8x128xf32>
    %57 = arith.divf %55, %56 : vector<8x128xf32>
    %58 = math.tanh %52 : vector<8x128xf32>
    %59 = vector.extract_strided_slice %57 {offsets = [0, 0], sizes = [8, 32], strides = [1, 1]} : vector<8x128xf32> to vector<8x32xf32>
    %60 = vector.extract_strided_slice %57 {offsets = [0, 32], sizes = [8, 32], strides = [1, 1]} : vector<8x128xf32> to vector<8x32xf32>
    %61 = vector.extract_strided_slice %58 {offsets = [0, 64], sizes = [8, 32], strides = [1, 1]} : vector<8x128xf32> to vector<8x32xf32>
    %62 = vector.extract_strided_slice %57 {offsets = [0, 96], sizes = [8, 32], strides = [1, 1]} : vector<8x128xf32> to vector<8x32xf32>
    %63 = arith.mulf %60, %46 : vector<8x32xf32>
    %64 = arith.mulf %59, %61 : vector<8x32xf32>
    %65 = arith.addf %63, %64 : vector<8x32xf32>
    %66 = math.tanh %65 : vector<8x32xf32>
    %67 = arith.mulf %62, %66 : vector<8x32xf32>
    %68 = vector.extract_strided_slice %7 {offsets = [3, 0, 0], sizes = [1, 8, 128], strides = [1, 1, 1]} : vector<8x8x128xf32> to vector<1x8x128xf32>
    %69 = vector.shape_cast %68 : vector<1x8x128xf32> to vector<8x128xf32>
    %cst_16 = arith.constant dense<0.000000e+00> : vector<8x128xf32>
    %70 = tpu.matmul %67, %8, %cst_16 {dimension_numbers = #tpu.dot_dimension_numbers<[1], [0], [0], [1], [0, 0, 1, 1], [], []>} : vector<8x32xf32>, vector<32x128xf32>, vector<8x128xf32> -> vector<8x128xf32>
    %71 = arith.addf %69, %70 : vector<8x128xf32>
    %72 = arith.negf %71 : vector<8x128xf32>
    %73 = math.exp %72 : vector<8x128xf32>
    %cst_17 = arith.constant 1.000000e+00 : f32
    %74 = vector.broadcast %cst_17 : f32 to vector<8x128xf32>
    %75 = arith.addf %74, %73 : vector<8x128xf32>
    %76 = arith.divf %74, %75 : vector<8x128xf32>
    %77 = math.tanh %71 : vector<8x128xf32>
    %78 = vector.extract_strided_slice %76 {offsets = [0, 0], sizes = [8, 32], strides = [1, 1]} : vector<8x128xf32> to vector<8x32xf32>
    %79 = vector.extract_strided_slice %76 {offsets = [0, 32], sizes = [8, 32], strides = [1, 1]} : vector<8x128xf32> to vector<8x32xf32>
    %80 = vector.extract_strided_slice %77 {offsets = [0, 64], sizes = [8, 32], strides = [1, 1]} : vector<8x128xf32> to vector<8x32xf32>
    %81 = vector.extract_strided_slice %76 {offsets = [0, 96], sizes = [8, 32], strides = [1, 1]} : vector<8x128xf32> to vector<8x32xf32>
    %82 = arith.mulf %79, %65 : vector<8x32xf32>
    %83 = arith.mulf %78, %80 : vector<8x32xf32>
    %84 = arith.addf %82, %83 : vector<8x32xf32>
    %85 = math.tanh %84 : vector<8x32xf32>
    %86 = arith.mulf %81, %85 : vector<8x32xf32>
    %87 = vector.extract_strided_slice %7 {offsets = [4, 0, 0], sizes = [1, 8, 128], strides = [1, 1, 1]} : vector<8x8x128xf32> to vector<1x8x128xf32>
    %88 = vector.shape_cast %87 : vector<1x8x128xf32> to vector<8x128xf32>
    %cst_18 = arith.constant dense<0.000000e+00> : vector<8x128xf32>
    %89 = tpu.matmul %86, %8, %cst_18 {dimension_numbers = #tpu.dot_dimension_numbers<[1], [0], [0], [1], [0, 0, 1, 1], [], []>} : vector<8x32xf32>, vector<32x128xf32>, vector<8x128xf32> -> vector<8x128xf32>
    %90 = arith.addf %88, %89 : vector<8x128xf32>
    %91 = arith.negf %90 : vector<8x128xf32>
    %92 = math.exp %91 : vector<8x128xf32>
    %cst_19 = arith.constant 1.000000e+00 : f32
    %93 = vector.broadcast %cst_19 : f32 to vector<8x128xf32>
    %94 = arith.addf %93, %92 : vector<8x128xf32>
    %95 = arith.divf %93, %94 : vector<8x128xf32>
    %96 = math.tanh %90 : vector<8x128xf32>
    %97 = vector.extract_strided_slice %95 {offsets = [0, 0], sizes = [8, 32], strides = [1, 1]} : vector<8x128xf32> to vector<8x32xf32>
    %98 = vector.extract_strided_slice %95 {offsets = [0, 32], sizes = [8, 32], strides = [1, 1]} : vector<8x128xf32> to vector<8x32xf32>
    %99 = vector.extract_strided_slice %96 {offsets = [0, 64], sizes = [8, 32], strides = [1, 1]} : vector<8x128xf32> to vector<8x32xf32>
    %100 = vector.extract_strided_slice %95 {offsets = [0, 96], sizes = [8, 32], strides = [1, 1]} : vector<8x128xf32> to vector<8x32xf32>
    %101 = arith.mulf %98, %84 : vector<8x32xf32>
    %102 = arith.mulf %97, %99 : vector<8x32xf32>
    %103 = arith.addf %101, %102 : vector<8x32xf32>
    %104 = math.tanh %103 : vector<8x32xf32>
    %105 = arith.mulf %100, %104 : vector<8x32xf32>
    %106 = vector.extract_strided_slice %7 {offsets = [5, 0, 0], sizes = [1, 8, 128], strides = [1, 1, 1]} : vector<8x8x128xf32> to vector<1x8x128xf32>
    %107 = vector.shape_cast %106 : vector<1x8x128xf32> to vector<8x128xf32>
    %cst_20 = arith.constant dense<0.000000e+00> : vector<8x128xf32>
    %108 = tpu.matmul %105, %8, %cst_20 {dimension_numbers = #tpu.dot_dimension_numbers<[1], [0], [0], [1], [0, 0, 1, 1], [], []>} : vector<8x32xf32>, vector<32x128xf32>, vector<8x128xf32> -> vector<8x128xf32>
    %109 = arith.addf %107, %108 : vector<8x128xf32>
    %110 = arith.negf %109 : vector<8x128xf32>
    %111 = math.exp %110 : vector<8x128xf32>
    %cst_21 = arith.constant 1.000000e+00 : f32
    %112 = vector.broadcast %cst_21 : f32 to vector<8x128xf32>
    %113 = arith.addf %112, %111 : vector<8x128xf32>
    %114 = arith.divf %112, %113 : vector<8x128xf32>
    %115 = math.tanh %109 : vector<8x128xf32>
    %116 = vector.extract_strided_slice %114 {offsets = [0, 0], sizes = [8, 32], strides = [1, 1]} : vector<8x128xf32> to vector<8x32xf32>
    %117 = vector.extract_strided_slice %114 {offsets = [0, 32], sizes = [8, 32], strides = [1, 1]} : vector<8x128xf32> to vector<8x32xf32>
    %118 = vector.extract_strided_slice %115 {offsets = [0, 64], sizes = [8, 32], strides = [1, 1]} : vector<8x128xf32> to vector<8x32xf32>
    %119 = vector.extract_strided_slice %114 {offsets = [0, 96], sizes = [8, 32], strides = [1, 1]} : vector<8x128xf32> to vector<8x32xf32>
    %120 = arith.mulf %117, %103 : vector<8x32xf32>
    %121 = arith.mulf %116, %118 : vector<8x32xf32>
    %122 = arith.addf %120, %121 : vector<8x32xf32>
    %123 = math.tanh %122 : vector<8x32xf32>
    %124 = arith.mulf %119, %123 : vector<8x32xf32>
    %125 = vector.extract_strided_slice %7 {offsets = [6, 0, 0], sizes = [1, 8, 128], strides = [1, 1, 1]} : vector<8x8x128xf32> to vector<1x8x128xf32>
    %126 = vector.shape_cast %125 : vector<1x8x128xf32> to vector<8x128xf32>
    %cst_22 = arith.constant dense<0.000000e+00> : vector<8x128xf32>
    %127 = tpu.matmul %124, %8, %cst_22 {dimension_numbers = #tpu.dot_dimension_numbers<[1], [0], [0], [1], [0, 0, 1, 1], [], []>} : vector<8x32xf32>, vector<32x128xf32>, vector<8x128xf32> -> vector<8x128xf32>
    %128 = arith.addf %126, %127 : vector<8x128xf32>
    %129 = arith.negf %128 : vector<8x128xf32>
    %130 = math.exp %129 : vector<8x128xf32>
    %cst_23 = arith.constant 1.000000e+00 : f32
    %131 = vector.broadcast %cst_23 : f32 to vector<8x128xf32>
    %132 = arith.addf %131, %130 : vector<8x128xf32>
    %133 = arith.divf %131, %132 : vector<8x128xf32>
    %134 = math.tanh %128 : vector<8x128xf32>
    %135 = vector.extract_strided_slice %133 {offsets = [0, 0], sizes = [8, 32], strides = [1, 1]} : vector<8x128xf32> to vector<8x32xf32>
    %136 = vector.extract_strided_slice %133 {offsets = [0, 32], sizes = [8, 32], strides = [1, 1]} : vector<8x128xf32> to vector<8x32xf32>
    %137 = vector.extract_strided_slice %134 {offsets = [0, 64], sizes = [8, 32], strides = [1, 1]} : vector<8x128xf32> to vector<8x32xf32>
    %138 = vector.extract_strided_slice %133 {offsets = [0, 96], sizes = [8, 32], strides = [1, 1]} : vector<8x128xf32> to vector<8x32xf32>
    %139 = arith.mulf %136, %122 : vector<8x32xf32>
    %140 = arith.mulf %135, %137 : vector<8x32xf32>
    %141 = arith.addf %139, %140 : vector<8x32xf32>
    %142 = math.tanh %141 : vector<8x32xf32>
    %143 = arith.mulf %138, %142 : vector<8x32xf32>
    %144 = vector.extract_strided_slice %7 {offsets = [7, 0, 0], sizes = [1, 8, 128], strides = [1, 1, 1]} : vector<8x8x128xf32> to vector<1x8x128xf32>
    %145 = vector.shape_cast %144 : vector<1x8x128xf32> to vector<8x128xf32>
    %cst_24 = arith.constant dense<0.000000e+00> : vector<8x128xf32>
    %146 = tpu.matmul %143, %8, %cst_24 {dimension_numbers = #tpu.dot_dimension_numbers<[1], [0], [0], [1], [0, 0, 1, 1], [], []>} : vector<8x32xf32>, vector<32x128xf32>, vector<8x128xf32> -> vector<8x128xf32>
    %147 = arith.addf %145, %146 : vector<8x128xf32>
    %148 = arith.negf %147 : vector<8x128xf32>
    %149 = math.exp %148 : vector<8x128xf32>
    %cst_25 = arith.constant 1.000000e+00 : f32
    %150 = vector.broadcast %cst_25 : f32 to vector<8x128xf32>
    %151 = arith.addf %150, %149 : vector<8x128xf32>
    %152 = arith.divf %150, %151 : vector<8x128xf32>
    %153 = math.tanh %147 : vector<8x128xf32>
    %154 = vector.extract_strided_slice %152 {offsets = [0, 0], sizes = [8, 32], strides = [1, 1]} : vector<8x128xf32> to vector<8x32xf32>
    %155 = vector.extract_strided_slice %152 {offsets = [0, 32], sizes = [8, 32], strides = [1, 1]} : vector<8x128xf32> to vector<8x32xf32>
    %156 = vector.extract_strided_slice %153 {offsets = [0, 64], sizes = [8, 32], strides = [1, 1]} : vector<8x128xf32> to vector<8x32xf32>
    %157 = vector.extract_strided_slice %152 {offsets = [0, 96], sizes = [8, 32], strides = [1, 1]} : vector<8x128xf32> to vector<8x32xf32>
    %158 = arith.mulf %155, %141 : vector<8x32xf32>
    %159 = arith.mulf %154, %156 : vector<8x32xf32>
    %160 = arith.addf %158, %159 : vector<8x32xf32>
    %161 = math.tanh %160 : vector<8x32xf32>
    %162 = arith.mulf %157, %161 : vector<8x32xf32>
    %c0_26 = arith.constant 0 : index
    %c0_27 = arith.constant 0 : index
    %163 = vector.load %arg4[%c0_26, %c0_27] : memref<32x32xf32, #tpu.memory_space<vmem>>, vector<32x32xf32>
    %cst_28 = arith.constant dense<0.000000e+00> : vector<8x32xf32>
    %164 = tpu.matmul %162, %163, %cst_28 {dimension_numbers = #tpu.dot_dimension_numbers<[1], [0], [0], [1], [0, 0, 1, 1], [], []>} : vector<8x32xf32>, vector<32x32xf32>, vector<8x32xf32> -> vector<8x32xf32>
    %c0_29 = arith.constant 0 : index
    %c0_30 = arith.constant 0 : index
    %165 = vector.load %arg5[%c0_29, %c0_30] : memref<1x32xf32, #tpu.memory_space<vmem>>, vector<1x32xf32>
    %166 = vector.broadcast %165 : vector<1x32xf32> to vector<8x32xf32>
    %167 = arith.addf %164, %166 : vector<8x32xf32>
    %c0_31 = arith.constant 0 : index
    %c0_32 = arith.constant 0 : index
    %168 = vector.load %arg6[%c0_31, %c0_32] : memref<32x2xf32, #tpu.memory_space<vmem>>, vector<32x2xf32>
    %cst_33 = arith.constant dense<0.000000e+00> : vector<8x2xf32>
    %169 = tpu.matmul %167, %168, %cst_33 {dimension_numbers = #tpu.dot_dimension_numbers<[1], [0], [0], [1], [0, 0, 1, 1], [], []>} : vector<8x32xf32>, vector<32x2xf32>, vector<8x2xf32> -> vector<8x2xf32>
    %c0_34 = arith.constant 0 : index
    %c0_35 = arith.constant 0 : index
    %170 = vector.load %arg13[%c0_34, %c0_35] : memref<8x2xf32, #tpu.memory_space<vmem>>, vector<8x2xf32>
    %171 = arith.addf %169, %170 : vector<8x2xf32>
    %cst_36 = arith.constant dense<0xFF800000> : vector<8xf32>
    %172 = vector.multi_reduction <maximumf>, %171, %cst_36 [1] : vector<8x2xf32> to vector<8xf32>
    %173 = vector.shape_cast %172 : vector<8xf32> to vector<8x1xf32>
    %174 = vector.broadcast %173 : vector<8x1xf32> to vector<8x2xf32>
    %175 = arith.subf %171, %174 : vector<8x2xf32>
    %176 = math.exp %175 : vector<8x2xf32>
    %cst_37 = arith.constant dense<0.000000e+00> : vector<8xf32>
    %177 = vector.multi_reduction <add>, %176, %cst_37 [1] : vector<8x2xf32> to vector<8xf32>
    %178 = vector.shape_cast %177 : vector<8xf32> to vector<8x1xf32>
    %179 = tpu.reciprocal %178 {approx = true} : vector<8x1xf32> -> vector<8x1xf32>
    %180 = arith.mulf %178, %179 : vector<8x1xf32>
    %cst_38 = arith.constant 2.000000e+00 : f32
    %181 = vector.broadcast %cst_38 : f32 to vector<8x1xf32>
    %182 = arith.subf %181, %180 : vector<8x1xf32>
    %183 = arith.mulf %179, %182 : vector<8x1xf32>
    %184 = vector.broadcast %183 : vector<8x1xf32> to vector<8x2xf32>
    %185 = arith.mulf %176, %184 : vector<8x2xf32>
    %c0_39 = arith.constant 0 : index
    %c0_40 = arith.constant 0 : index
    %186 = vector.load %arg7[%c0_39, %c0_40] : memref<32x32xf32, #tpu.memory_space<vmem>>, vector<32x32xf32>
    %cst_41 = arith.constant dense<0.000000e+00> : vector<8x32xf32>
    %187 = tpu.matmul %162, %186, %cst_41 {dimension_numbers = #tpu.dot_dimension_numbers<[1], [0], [0], [1], [0, 0, 1, 1], [], []>} : vector<8x32xf32>, vector<32x32xf32>, vector<8x32xf32> -> vector<8x32xf32>
    %c0_42 = arith.constant 0 : index
    %c0_43 = arith.constant 0 : index
    %188 = vector.load %arg8[%c0_42, %c0_43] : memref<1x32xf32, #tpu.memory_space<vmem>>, vector<1x32xf32>
    %189 = vector.broadcast %188 : vector<1x32xf32> to vector<8x32xf32>
    %190 = arith.addf %187, %189 : vector<8x32xf32>
    %c0_44 = arith.constant 0 : index
    %c0_45 = arith.constant 0 : index
    %191 = vector.load %arg9[%c0_44, %c0_45] : memref<32x16xf32, #tpu.memory_space<vmem>>, vector<32x16xf32>
    %cst_46 = arith.constant dense<0.000000e+00> : vector<8x16xf32>
    %192 = tpu.matmul %190, %191, %cst_46 {dimension_numbers = #tpu.dot_dimension_numbers<[1], [0], [0], [1], [0, 0, 1, 1], [], []>} : vector<8x32xf32>, vector<32x16xf32>, vector<8x16xf32> -> vector<8x16xf32>
    %c0_47 = arith.constant 0 : index
    %c0_48 = arith.constant 0 : index
    %193 = vector.load %arg14[%c0_47, %c0_48] : memref<8x16xf32, #tpu.memory_space<vmem>>, vector<8x16xf32>
    %194 = arith.addf %192, %193 : vector<8x16xf32>
    %c0_49 = arith.constant 0 : index
    %c0_50 = arith.constant 0 : index
    %195 = vector.load %arg10[%c0_49, %c0_50] : memref<2x16xf32, #tpu.memory_space<vmem>>, vector<2x16xf32>
    %196 = vector.extract_strided_slice %195 {offsets = [0, 0], sizes = [1, 16], strides = [1, 1]} : vector<2x16xf32> to vector<1x16xf32>
    %197 = vector.broadcast %196 : vector<1x16xf32> to vector<8x16xf32>
    %198 = arith.addf %194, %197 : vector<8x16xf32>
    %cst_51 = arith.constant dense<0xFF800000> : vector<8xf32>
    %199 = vector.multi_reduction <maximumf>, %198, %cst_51 [1] : vector<8x16xf32> to vector<8xf32>
    %200 = vector.shape_cast %199 : vector<8xf32> to vector<8x1xf32>
    %201 = vector.broadcast %200 : vector<8x1xf32> to vector<8x16xf32>
    %202 = arith.subf %198, %201 : vector<8x16xf32>
    %203 = math.exp %202 : vector<8x16xf32>
    %cst_52 = arith.constant dense<0.000000e+00> : vector<8xf32>
    %204 = vector.multi_reduction <add>, %203, %cst_52 [1] : vector<8x16xf32> to vector<8xf32>
    %205 = vector.shape_cast %204 : vector<8xf32> to vector<8x1xf32>
    %206 = tpu.reciprocal %205 {approx = true} : vector<8x1xf32> -> vector<8x1xf32>
    %207 = arith.mulf %205, %206 : vector<8x1xf32>
    %cst_53 = arith.constant 2.000000e+00 : f32
    %208 = vector.broadcast %cst_53 : f32 to vector<8x1xf32>
    %209 = arith.subf %208, %207 : vector<8x1xf32>
    %210 = arith.mulf %206, %209 : vector<8x1xf32>
    %211 = vector.broadcast %210 : vector<8x1xf32> to vector<8x16xf32>
    %212 = arith.mulf %203, %211 : vector<8x16xf32>
    %213 = vector.extract_strided_slice %195 {offsets = [1, 0], sizes = [1, 16], strides = [1, 1]} : vector<2x16xf32> to vector<1x16xf32>
    %214 = vector.broadcast %213 : vector<1x16xf32> to vector<8x16xf32>
    %215 = arith.addf %194, %214 : vector<8x16xf32>
    %cst_54 = arith.constant dense<0xFF800000> : vector<8xf32>
    %216 = vector.multi_reduction <maximumf>, %215, %cst_54 [1] : vector<8x16xf32> to vector<8xf32>
    %217 = vector.shape_cast %216 : vector<8xf32> to vector<8x1xf32>
    %218 = vector.broadcast %217 : vector<8x1xf32> to vector<8x16xf32>
    %219 = arith.subf %215, %218 : vector<8x16xf32>
    %220 = math.exp %219 : vector<8x16xf32>
    %cst_55 = arith.constant dense<0.000000e+00> : vector<8xf32>
    %221 = vector.multi_reduction <add>, %220, %cst_55 [1] : vector<8x16xf32> to vector<8xf32>
    %222 = vector.shape_cast %221 : vector<8xf32> to vector<8x1xf32>
    %223 = tpu.reciprocal %222 {approx = true} : vector<8x1xf32> -> vector<8x1xf32>
    %224 = arith.mulf %222, %223 : vector<8x1xf32>
    %cst_56 = arith.constant 2.000000e+00 : f32
    %225 = vector.broadcast %cst_56 : f32 to vector<8x1xf32>
    %226 = arith.subf %225, %224 : vector<8x1xf32>
    %227 = arith.mulf %223, %226 : vector<8x1xf32>
    %228 = vector.broadcast %227 : vector<8x1xf32> to vector<8x16xf32>
    %229 = arith.mulf %220, %228 : vector<8x16xf32>
    %c0_57 = arith.constant 0 : index
    %c0_58 = arith.constant 0 : index
    %230 = vector.load %arg11[%c0_57, %c0_58] : memref<32x2xf32, #tpu.memory_space<vmem>>, vector<32x2xf32>
    %cst_59 = arith.constant dense<0.000000e+00> : vector<8x2xf32>
    %231 = tpu.matmul %162, %230, %cst_59 {dimension_numbers = #tpu.dot_dimension_numbers<[1], [0], [0], [1], [0, 0, 1, 1], [], []>} : vector<8x32xf32>, vector<32x2xf32>, vector<8x2xf32> -> vector<8x2xf32>
    %c0_60 = arith.constant 0 : index
    %c0_61 = arith.constant 0 : index
    %232 = vector.load %arg12[%c0_60, %c0_61] : memref<1x2xf32, #tpu.memory_space<vmem>>, vector<1x2xf32>
    %233 = vector.broadcast %232 : vector<1x2xf32> to vector<8x2xf32>
    %234 = arith.addf %231, %233 : vector<8x2xf32>
    %cst_62 = arith.constant 0.000000e+00 : f32
    %235 = vector.broadcast %cst_62 : f32 to vector<8x92xf32>
    %236 = tpu.concatenate %185, %234, %212, %229, %235 in 1 : vector<8x2xf32>, vector<8x2xf32>, vector<8x16xf32>, vector<8x16xf32>, vector<8x92xf32> -> vector<8x128xf32>
    %c0_63 = arith.constant 0 : index
    %c0_64 = arith.constant 0 : index
    %237 = vector.load %arg15[%c0_63, %c0_64] : memref<8x128xf32, #tpu.memory_space<vmem>>, vector<8x128xf32>
    tpu.vector_store %arg15[%c0_63, %c0_64], %236 {strides = array<i32>} : memref<8x128xf32, #tpu.memory_space<vmem>>, vector<8x128xf32>,
    return
  }
}

</mosaic_0001>

<bundles_post_ra>
// kernel: policy_network_forward.1
= control target key start
LH: loop header
LB: loop body
LE: loop exit
PB: predicated region body
PF: predicated region fallthrough
CT: control target
= control target key end

     0   :  { %vm64_vm0 = vcmask 130048   ;;  %v970_v7 = vmov 0.0   ;;  %s971_s17 = smov 64   ;;  %vm134_vm5 = vcmask 261120   ;;  %s973_s19 = smov 2   ;;  %s1297_s2 = inlined_call_operand.vmem [shape: f32[32,128], index: 2, kind: input, shape index: {}]   ;;  %s1298_s1 = inlined_call_operand.vmem [shape: f32[16,128], index: 1, kind: input, shape index: {}]   ;;  %s1299_s0 = inlined_call_operand.vmem [shape: f32[8,8,16], index: 0, kind: input, shape index: {}]   ;;  %s1300_s3 = inlined_call_operand.vmem [shape: f32[1,128], index: 3, kind: input, shape index: {}]   ;;  %s1301_s7 = inlined_call_operand.vmem [shape: f32[32,32], index: 7, kind: input, shape index: {}]   ;;  %s1302_s4 = inlined_call_operand.vmem [shape: f32[32,32], index: 4, kind: input, shape index: {}]   ;;  %s1303_s5 = inlined_call_operand.vmem [shape: f32[1,32], index: 5, kind: input, shape index: {}]   ;;  %s1304_s9 = inlined_call_operand.vmem [shape: f32[32,16], index: 9, kind: input, shape index: {}]   ;;  %s1305_s6 = inlined_call_operand.vmem [shape: f32[32,2], index: 6, kind: input, shape index: {}]   ;;  %s1306_s8 = inlined_call_operand.vmem [shape: f32[1,32], index: 8, kind: input, shape index: {}]   ;;  %s1307_s11 = inlined_call_operand.vmem [shape: f32[32,2], index: 11, kind: input, shape index: {}]   ;;  %s1308_s12 = inlined_call_operand.vmem [shape: f32[1,2], index: 12, kind: input, shape index: {}]   ;;  %s1309_s13 = inlined_call_operand.vmem [shape: f32[8,2], index: 13, kind: input, shape index: {}]   ;;  %s1310_s10 = inlined_call_operand.vmem [shape: f32[2,16], index: 10, kind: input, shape index: {}]   ;;  %s1311_s14 = inlined_call_operand.vmem [shape: f32[8,16], index: 14, kind: input, shape index: {}]   ;;  %s1312_s15 = inlined_call_operand.vmem [shape: f32[8,128], index: 15, kind: output, shape index: {}]  }
   0x1   :  { %v1059_v0 = vld [vmem:[%s1297_s2 + $0x18] sm:$0xff]  ;;  %v59_v1 = vld [vmem:[%s1298_s1 + $0x8] sm:$0xff]  ;;  %v1067_v2 = vld [vmem:[%s1297_s2 + $0x10] sm:$0xff] }
   0x2   :  { %150 = vmatpush.msra.mxu1 %v1059_v0  ;;  %103 = vmatpush.msra.mxu0 %v59_v1  ;;  %v58_v3 = vld [vmem:[%s1298_s1] sm:$0xff]  ;;  %v1079_v5 = vld [vmem:[%s1297_s2 + $0x8] sm:$0xff]  ;;  %v56_v33 = vld [vmem:[%s1299_s0 + $0x30] sm:$0xff] }
   0x3   :  { %v50_v4 = vld [vmem:[%s1299_s0] sm:$0xff]  ;;  %882 = vmatpush.msra.mxu2 %v59_v1  ;;  %276 = vmatpush.msra.mxu3 %v1059_v0  ;;  %v57_v34 = vld [vmem:[%s1299_s0 + $0x38] sm:$0xff]  ;;  %v51_v37 = vld [vmem:[%s1299_s0 + $0x8] sm:$0xff] }
   0x4   :  { %151 = vmatpush.msra.mxu1 %v1067_v2  ;;  %104 = vmatpush.msra.mxu0 %v58_v3  ;;  %v1087_v6 = vld [vmem:[%s1297_s2] sm:$0xff] }
   0x5   :  { %854 = vmatmul.msk.f32.vlgmr.msra.gmra.mxu0 %vm64_vm0, %v50_v4  ;;  %883 = vmatpush.msra.mxu2 %v58_v3  ;;  %v1113_v8 = vld [vmem:[%s1300_s3] ss:$0 sm:$0xff]  ;;  %s972_s3 = smov 32   ;;  %v52_v3 = vld [vmem:[%s1299_s0 + $0x10] sm:$0xff] }
   0x6   :  { %152 = vmatpush.msra.mxu1 %v1079_v5  ;;  %277 = vmatpush.msra.mxu3 %v1067_v2 }
   0x7   :  { %213 = vmatpush.msrb.mxu2 %v1059_v0 }
   0x8   :  { %153 = vmatpush.msra.mxu1 %v1087_v6  ;;  %278 = vmatpush.msra.mxu3 %v1079_v5 }
   0x9   :  { %214 = vmatpush.msrb.mxu2 %v1067_v2  ;;  %154 = vmatmul.f32.vlgmr.msra.gmra.mxu1 %v970_v7 }
   0xa   :  { %339 = vmatpush.msrb.mxu1 %v1059_v0  ;;  %279 = vmatpush.msra.mxu3 %v1087_v6 }
   0xb   :  { %215 = vmatpush.msrb.mxu2 %v1079_v5 }
   0xc   :  { %340 = vmatpush.msrb.mxu1 %v1067_v2  ;;  %465 = vmatpush.msrb.mxu3 %v1059_v0 }
   0xd   :  { %216 = vmatpush.msrb.mxu2 %v1087_v6  ;;  %855 = vmatmul.msk.f32.gmra.mxu0 %vm64_vm0, %v51_v37 }
   0xe   :  { %341 = vmatpush.msrb.mxu1 %v1079_v5  ;;  %466 = vmatpush.msrb.mxu3 %v1067_v2 }
   0xf   :  { %860 = vmatmul.msk.f32.vlgmr.msra.gmra.mxu2 %vm64_vm0, %v56_v33 }
  0x10   :  { %342 = vmatpush.msrb.mxu1 %v1087_v6  ;;  %467 = vmatpush.msrb.mxu3 %v1079_v5 }
  0x11   :  { %402 = vmatpush.msra.mxu2 %v1059_v0 }
  0x12   :  { %528 = vmatpush.msra.mxu1 %v1059_v0  ;;  %468 = vmatpush.msrb.mxu3 %v1087_v6 }
  0x13   :  { %403 = vmatpush.msra.mxu2 %v1067_v2 }
  0x14   :  { %529 = vmatpush.msra.mxu1 %v1067_v2 }
  0x15   :  { %404 = vmatpush.msra.mxu2 %v1079_v5  ;;  %856 = vmatmul.msk.f32.gmra.mxu0 %vm64_vm0, %v52_v3 }
  0x16   :  { %530 = vmatpush.msra.mxu1 %v1079_v5 }
  0x17   :  { %405 = vmatpush.msra.mxu2 %v1087_v6 }
  0x18   :  { %531 = vmatpush.msra.mxu1 %v1087_v6  ;;  %861 = vmatmul.msk.f32.gmra.mxu2 %vm64_vm0, %v57_v34 }
  0x82   :  { %v106_v9 = vpop.f32.mrf.mxu0 }
  0x83   :  { %v107_v10 = vadd.f32 %v1113_v8, %v106_v9 }
  0x86   :  { %v155_v11 = vpop.f32.mrf.mxu1 }
  0x87   :  { %v158_v12 = vadd.f32 %v155_v11, %v107_v10 }
  0x89   :  { %894 = vtanh.f32 %v158_v12  ;;  %v862_v14 = vmul.f32 -1.442695, %v158_v12 }
  0x8a   :  { %v109_v41 = vpop.f32.mrf.mxu0 }
  0x8b   :  { %896 = vpow2.f32 %v862_v14  ;;  %v110_v42 = vadd.f32 %v1113_v8, %v109_v41 }
  0x8f   :  { %v895_v13 = vpop.eup %894 }
  0x90   :  { %181 = vrot.lane.b32.xlu0 %v895_v13, %s971_s17 }
  0x91   :  { %v897_v15 = vpop.eup %896 }
  0x92   :  { %v162_v16 = vadd.f32 1.0, %v897_v15  ;;  %v1141_v39 = vpop.f32.mrf.mxu2 }
  0x94   :  { %898 = vrcp.f32 %v162_v16  ;;  %v174_v22 = vand.u32 2147483648, %v162_v16  ;;  %vm168_vm2 = vweird.f32 %v162_v16  ;;  %v172_v23 = vand.u32 2147483647, %v162_v16 }
  0x96   :  { %v175_v25 = vor.u32 1.1754944e-38, %v174_v22  ;;  %vm173_vm4 = vcmp.eq.f32.partialorder %v172_v23, 8.507059e+37 }
  0x9a   :  { %v899_v17 = vpop.eup %898 }
  0x9b   :  { %v164_v18 = vmul.f32 %v899_v17, %v162_v16  ;;  %vm169_vm1 = vweird.f32 %v899_v17  ;;  %v1143_v40 = vpop.f32.mrf.mxu2 }
  0x9c   :  { %vm170_vm3 = vmor %vm168_vm2, %vm169_vm1 }
  0x9d   :  { %v165_v19 = vsub.f32 1.0, %v164_v18 }
  0x9f   :  { %v166_v20 = vmul.f32 %v899_v17, %v165_v19 }
  0xa1   :  { %v167_v21 = vadd.f32 %v899_v17, %v166_v20 }
  0xa3   :  { %v171_v24 = vsel %vm170_vm3, %v899_v17, %v167_v21 }
  0xa4   :  { %v176_v27 = vsel %vm173_vm4, %v175_v25, %v171_v24 }
  0xa5   :  { %v179_v29 = vmul.f32 0.0, %v176_v27 }
 0x102   :  { %v182_v26 = vpop.permute.xlu0 %181 }
 0x103   :  { %v184_v28 = vmul.f32 %v182_v26, %v176_v27 }
 0x105   :  { %186 = vrot.lane.b32.xlu0 %v184_v28, %s972_s3 }
 0x177   :  { %v187_v30 = vpop.permute.xlu0 %186 }
 0x178   :  { %v189_v31 = vadd.f32 %v187_v30, %v179_v29  ;;  %v53_v30 = vld [vmem:[%s1299_s0 + $0x18] sm:$0xff] }
 0x179   :  { %857 = vmatmul.msk.f32.gmra.mxu0 %vm64_vm0, %v53_v30 }
 0x17a   :  { %900 = vtanh.f32 %v189_v31 }
 0x180   :  { %v901_v32 = vpop.eup %900 }
 0x181   :  { %192 = vrot.lane.b32.xlu1 %v901_v32, %s971_s17 }
 0x1f3   :  { %v193_v35 = vpop.permute.xlu1 %192 }
 0x1f4   :  { %v195_v36 = vmul.f32 %v193_v35, %v176_v27 }
 0x1f6   :  { %197 = vrot.lane.b32.xlu1 %v195_v36, %s972_s3 }
 0x268   :  { %v198_v38 = vpop.permute.xlu1 %197 }
 0x269   :  { %863 = vmatmul.msk.f32.vlgmr.msrb.gmra.mxu2 %vm134_vm5, %v198_v38 }
 0x26a   :  { %591 = vmatpush.msrb.mxu2 %v1059_v0 }
 0x26c   :  { %592 = vmatpush.msrb.mxu2 %v1067_v2 }
 0x26e   :  { %593 = vmatpush.msrb.mxu2 %v1079_v5  ;;  %v112_v5 = vpop.f32.mrf.mxu0 }
 0x270   :  { %594 = vmatpush.msrb.mxu2 %v1087_v6  ;;  %v113_v6 = vadd.f32 %v1113_v8, %v112_v5 }
 0x276   :  { %v115_v34 = vpop.f32.mrf.mxu0 }
 0x277   :  { %v116_v35 = vadd.f32 %v1113_v8, %v115_v34 }
 0x2ec   :  { %v218_v43 = vpop.f32.mrf.mxu2 }
 0x2ed   :  { %v221_v44 = vadd.f32 %v218_v43, %v110_v42 }
 0x2ef   :  { %902 = vtanh.f32 %v221_v44  ;;  %v864_v46 = vmul.f32 -1.442695, %v221_v44 }
 0x2f1   :  { %904 = vpow2.f32 %v864_v46 }
 0x2f5   :  { %v903_v45 = vpop.eup %902 }
 0x2f6   :  { %244 = vrot.lane.b32.xlu2 %v903_v45, %s971_s17 }
 0x2f7   :  { %v905_v47 = vpop.eup %904 }
 0x2f8   :  { %v225_v48 = vadd.f32 1.0, %v905_v47 }
 0x2fa   :  { %906 = vrcp.f32 %v225_v48  ;;  %v237_v54 = vand.u32 2147483648, %v225_v48  ;;  %vm231_vm7 = vweird.f32 %v225_v48  ;;  %v235_v55 = vand.u32 2147483647, %v225_v48 }
 0x2fc   :  { %v238_v57 = vor.u32 1.1754944e-38, %v237_v54  ;;  %vm236_vm9 = vcmp.eq.f32.partialorder %v235_v55, 8.507059e+37 }
 0x300   :  { %v907_v49 = vpop.eup %906 }
 0x301   :  { %v227_v50 = vmul.f32 %v907_v49, %v225_v48  ;;  %vm232_vm6 = vweird.f32 %v907_v49 }
 0x302   :  { %vm233_vm8 = vmor %vm231_vm7, %vm232_vm6 }
 0x303   :  { %v228_v51 = vsub.f32 1.0, %v227_v50 }
 0x305   :  { %v229_v52 = vmul.f32 %v907_v49, %v228_v51 }
 0x307   :  { %v230_v53 = vadd.f32 %v907_v49, %v229_v52 }
 0x309   :  { %v234_v56 = vsel %vm233_vm8, %v907_v49, %v230_v53 }
 0x30a   :  { %v239_v59 = vsel %vm236_vm9, %v238_v57, %v234_v56 }
 0x30b   :  { %v242_v61 = vmul.f32 %v239_v59, %v189_v31 }
 0x350   :  { %v245_v58 = vpop.permute.xlu2 %244 }
 0x351   :  { %v247_v60 = vmul.f32 %v245_v58, %v239_v59 }
 0x353   :  { %249 = vrot.lane.b32.xlu2 %v247_v60, %s972_s3 }
 0x3ad   :  { %v250_v62 = vpop.permute.xlu2 %249 }
 0x3ae   :  { %v252_v63 = vadd.f32 %v250_v62, %v242_v61  ;;  %v54_v62 = vld [vmem:[%s1299_s0 + $0x20] sm:$0xff] }
 0x3af   :  { %858 = vmatmul.msk.f32.gmra.mxu0 %vm64_vm0, %v54_v62 }
 0x3b0   :  { %908 = vtanh.f32 %v252_v63 }
 0x3b6   :  { %v909_v0 = vpop.eup %908 }
 0x3b7   :  { %255 = vrot.lane.b32.xlu0 %v909_v0, %s971_s17 }
 0x429   :  { %v256_v1 = vpop.permute.xlu0 %255 }
 0x42a   :  { %v258_v2 = vmul.f32 %v256_v1, %v239_v59 }
 0x42c   :  { %260 = vrot.lane.b32.xlu1 %v258_v2, %s972_s3  ;;  %v118_v0 = vpop.f32.mrf.mxu0 }
 0x42d   :  { %v119_v1 = vadd.f32 %v1113_v8, %v118_v0 }
 0x49e   :  { %v261_v4 = vpop.permute.xlu1 %260 }
 0x49f   :  { %865 = vmatmul.msk.f32.vlgmr.msra.gmra.mxu3 %vm134_vm5, %v261_v4 }
 0x522   :  { %v281_v7 = vpop.f32.mrf.mxu3 }
 0x523   :  { %v284_v9 = vadd.f32 %v281_v7, %v113_v6 }
 0x525   :  { %910 = vtanh.f32 %v284_v9  ;;  %v866_v11 = vmul.f32 -1.442695, %v284_v9 }
 0x527   :  { %912 = vpow2.f32 %v866_v11 }
 0x52b   :  { %v911_v10 = vpop.eup %910 }
 0x52c   :  { %307 = vrot.lane.b32.xlu2 %v911_v10, %s971_s17 }
 0x52d   :  { %v913_v12 = vpop.eup %912 }
 0x52e   :  { %v288_v13 = vadd.f32 1.0, %v913_v12 }
 0x530   :  { %914 = vrcp.f32 %v288_v13  ;;  %v300_v19 = vand.u32 2147483648, %v288_v13  ;;  %vm294_vm11 = vweird.f32 %v288_v13  ;;  %v298_v20 = vand.u32 2147483647, %v288_v13 }
 0x532   :  { %v301_v22 = vor.u32 1.1754944e-38, %v300_v19  ;;  %vm299_vm13 = vcmp.eq.f32.partialorder %v298_v20, 8.507059e+37 }
 0x536   :  { %v915_v14 = vpop.eup %914 }
 0x537   :  { %v290_v15 = vmul.f32 %v915_v14, %v288_v13  ;;  %vm295_vm10 = vweird.f32 %v915_v14 }
 0x538   :  { %vm296_vm12 = vmor %vm294_vm11, %vm295_vm10 }
 0x539   :  { %v291_v16 = vsub.f32 1.0, %v290_v15 }
 0x53b   :  { %v292_v17 = vmul.f32 %v915_v14, %v291_v16 }
 0x53d   :  { %v293_v18 = vadd.f32 %v915_v14, %v292_v17 }
 0x53f   :  { %v297_v21 = vsel %vm296_vm12, %v915_v14, %v293_v18 }
 0x540   :  { %v302_v24 = vsel %vm299_vm13, %v301_v22, %v297_v21 }
 0x541   :  { %v305_v26 = vmul.f32 %v302_v24, %v252_v63 }
 0x586   :  { %v308_v23 = vpop.permute.xlu2 %307 }
 0x587   :  { %v310_v25 = vmul.f32 %v308_v23, %v302_v24 }
 0x589   :  { %312 = vrot.lane.b32.xlu0 %v310_v25, %s972_s3 }
 0x5fb   :  { %v313_v27 = vpop.permute.xlu0 %312 }
 0x5fc   :  { %v315_v28 = vadd.f32 %v313_v27, %v305_v26  ;;  %v55_v27 = vld [vmem:[%s1299_s0 + $0x28] sm:$0xff] }
 0x5fd   :  { %859 = vmatmul.msk.f32.gmra.mxu0 %vm64_vm0, %v55_v27 }
 0x5fe   :  { %916 = vtanh.f32 %v315_v28 }
 0x604   :  { %v917_v29 = vpop.eup %916 }
 0x605   :  { %318 = vrot.lane.b32.xlu1 %v917_v29, %s971_s17 }
 0x677   :  { %v319_v31 = vpop.permute.xlu1 %318 }
 0x678   :  { %v321_v32 = vmul.f32 %v319_v31, %v302_v24 }
 0x67a   :  { %323 = vrot.lane.b32.xlu2 %v321_v32, %s972_s3  ;;  %v121_v29 = vpop.f32.mrf.mxu0 }
 0x67b   :  { %v122_v30 = vadd.f32 %v1113_v8, %v121_v29 }
 0x6d4   :  { %v324_v33 = vpop.permute.xlu2 %323 }
 0x6d5   :  { %867 = vmatmul.msk.f32.vlgmr.msrb.gmra.mxu1 %vm134_vm5, %v324_v33 }
 0x752   :  { %v344_v36 = vpop.f32.mrf.mxu1 }
 0x753   :  { %v347_v37 = vadd.f32 %v344_v36, %v116_v35 }
 0x755   :  { %918 = vtanh.f32 %v347_v37  ;;  %v868_v41 = vmul.f32 -1.442695, %v347_v37 }
 0x757   :  { %920 = vpow2.f32 %v868_v41 }
 0x75b   :  { %v919_v38 = vpop.eup %918 }
 0x75c   :  { %370 = vrot.lane.b32.xlu0 %v919_v38, %s971_s17 }
 0x75d   :  { %v921_v42 = vpop.eup %920 }
 0x75e   :  { %v351_v43 = vadd.f32 1.0, %v921_v42 }
 0x760   :  { %922 = vrcp.f32 %v351_v43  ;;  %v363_v49 = vand.u32 2147483648, %v351_v43  ;;  %vm357_vm15 = vweird.f32 %v351_v43  ;;  %v361_v50 = vand.u32 2147483647, %v351_v43 }
 0x762   :  { %v364_v52 = vor.u32 1.1754944e-38, %v363_v49  ;;  %vm362_vm2 = vcmp.eq.f32.partialorder %v361_v50, 8.507059e+37 }
 0x766   :  { %v923_v44 = vpop.eup %922 }
 0x767   :  { %v353_v45 = vmul.f32 %v923_v44, %v351_v43  ;;  %vm358_vm14 = vweird.f32 %v923_v44 }
 0x768   :  { %vm359_vm1 = vmor %vm357_vm15, %vm358_vm14 }
 0x769   :  { %v354_v46 = vsub.f32 1.0, %v353_v45 }
 0x76b   :  { %v355_v47 = vmul.f32 %v923_v44, %v354_v46 }
 0x76d   :  { %v356_v48 = vadd.f32 %v923_v44, %v355_v47 }
 0x76f   :  { %v360_v51 = vsel %vm359_vm1, %v923_v44, %v356_v48 }
 0x770   :  { %v365_v54 = vsel %vm362_vm2, %v364_v52, %v360_v51 }
 0x771   :  { %v368_v56 = vmul.f32 %v365_v54, %v315_v28 }
 0x7ce   :  { %v371_v53 = vpop.permute.xlu0 %370 }
 0x7cf   :  { %v373_v55 = vmul.f32 %v371_v53, %v365_v54 }
 0x7d1   :  { %375 = vrot.lane.b32.xlu1 %v373_v55, %s972_s3 }
 0x843   :  { %v376_v57 = vpop.permute.xlu1 %375 }
 0x844   :  { %v378_v58 = vadd.f32 %v376_v57, %v368_v56 }
 0x846   :  { %924 = vtanh.f32 %v378_v58 }
 0x84c   :  { %v925_v59 = vpop.eup %924 }
 0x84d   :  { %381 = vrot.lane.b32.xlu2 %v925_v59, %s971_s17 }
 0x8a7   :  { %v382_v60 = vpop.permute.xlu2 %381 }
 0x8a8   :  { %v384_v61 = vmul.f32 %v382_v60, %v365_v54 }
 0x8aa   :  { %386 = vrot.lane.b32.xlu0 %v384_v61, %s972_s3 }
 0x91c   :  { %v387_v63 = vpop.permute.xlu0 %386 }
 0x91d   :  { %869 = vmatmul.msk.f32.vlgmr.msra.gmra.mxu2 %vm134_vm5, %v387_v63 }
 0x9a0   :  { %v407_v2 = vpop.f32.mrf.mxu2 }
 0x9a1   :  { %v410_v3 = vadd.f32 %v407_v2, %v119_v1 }
 0x9a3   :  { %926 = vtanh.f32 %v410_v3  ;;  %v870_v5 = vmul.f32 -1.442695, %v410_v3 }
 0x9a5   :  { %928 = vpow2.f32 %v870_v5 }
 0x9a9   :  { %v927_v4 = vpop.eup %926 }
 0x9aa   :  { %433 = vrot.lane.b32.xlu1 %v927_v4, %s971_s17 }
 0x9ab   :  { %v929_v6 = vpop.eup %928 }
 0x9ac   :  { %v414_v7 = vadd.f32 1.0, %v929_v6 }
 0x9ae   :  { %930 = vrcp.f32 %v414_v7  ;;  %v426_v14 = vand.u32 2147483648, %v414_v7  ;;  %vm420_vm4 = vweird.f32 %v414_v7  ;;  %v424_v15 = vand.u32 2147483647, %v414_v7 }
 0x9b0   :  { %v427_v17 = vor.u32 1.1754944e-38, %v426_v14  ;;  %vm425_vm7 = vcmp.eq.f32.partialorder %v424_v15, 8.507059e+37 }
 0x9b4   :  { %v931_v9 = vpop.eup %930 }
 0x9b5   :  { %v416_v10 = vmul.f32 %v931_v9, %v414_v7  ;;  %vm421_vm3 = vweird.f32 %v931_v9 }
 0x9b6   :  { %vm422_vm6 = vmor %vm420_vm4, %vm421_vm3 }
 0x9b7   :  { %v417_v11 = vsub.f32 1.0, %v416_v10 }
 0x9b9   :  { %v418_v12 = vmul.f32 %v931_v9, %v417_v11 }
 0x9bb   :  { %v419_v13 = vadd.f32 %v931_v9, %v418_v12 }
 0x9bd   :  { %v423_v16 = vsel %vm422_vm6, %v931_v9, %v419_v13  ;;  %vm698_vm6 = vcmask 15360  }
 0x9be   :  { %v428_v19 = vsel %vm425_vm7, %v427_v17, %v423_v16  ;;  %vm847_vm7 = vcmask 293888  }
 0x9bf   :  { %v431_v21 = vmul.f32 %v428_v19, %v378_v58  ;;  %v125_v58 = vadd.f32 %v1113_v8, %v1141_v39 }
 0xa1c   :  { %v434_v18 = vpop.permute.xlu1 %433 }
 0xa1d   :  { %v436_v20 = vmul.f32 %v434_v18, %v428_v19 }
 0xa1f   :  { %438 = vrot.lane.b32.xlu2 %v436_v20, %s972_s3  ;;  %v128_v20 = vadd.f32 %v1113_v8, %v1143_v40 }
 0xa79   :  { %v439_v22 = vpop.permute.xlu2 %438 }
 0xa7a   :  { %v441_v23 = vadd.f32 %v439_v22, %v431_v21 }
 0xa7c   :  { %932 = vtanh.f32 %v441_v23 }
 0xa82   :  { %v933_v24 = vpop.eup %932 }
 0xa83   :  { %444 = vrot.lane.b32.xlu0 %v933_v24, %s971_s17 }
 0xaf5   :  { %v445_v25 = vpop.permute.xlu0 %444 }
 0xaf6   :  { %v447_v26 = vmul.f32 %v445_v25, %v428_v19 }
 0xaf8   :  { %449 = vrot.lane.b32.xlu1 %v447_v26, %s972_s3 }
 0xb6a   :  { %v450_v28 = vpop.permute.xlu1 %449 }
 0xb6b   :  { %871 = vmatmul.msk.f32.vlgmr.msrb.gmra.mxu3 %vm134_vm5, %v450_v28 }
 0xbee   :  { %v470_v31 = vpop.f32.mrf.mxu3 }
 0xbef   :  { %v473_v32 = vadd.f32 %v470_v31, %v122_v30 }
 0xbf1   :  { %934 = vtanh.f32 %v473_v32  ;;  %v872_v34 = vmul.f32 -1.442695, %v473_v32 }
 0xbf3   :  { %936 = vpow2.f32 %v872_v34 }
 0xbf7   :  { %v935_v33 = vpop.eup %934 }
 0xbf8   :  { %496 = vrot.lane.b32.xlu2 %v935_v33, %s971_s17 }
 0xbf9   :  { %v937_v35 = vpop.eup %936 }
 0xbfa   :  { %v477_v36 = vadd.f32 1.0, %v937_v35 }
 0xbfc   :  { %938 = vrcp.f32 %v477_v36  ;;  %v489_v44 = vand.u32 2147483648, %v477_v36  ;;  %vm483_vm9 = vweird.f32 %v477_v36  ;;  %v487_v45 = vand.u32 2147483647, %v477_v36 }
 0xbfe   :  { %v490_v47 = vor.u32 1.1754944e-38, %v489_v44  ;;  %vm488_vm11 = vcmp.eq.f32.partialorder %v487_v45, 8.507059e+37  ;;  %v640_v44 = vld [vmem:[%s1302_s4 + $0x18] sm:$0xff]  ;;  %v715_v45 = vld [vmem:[%s1301_s7 + $0x10] sm:$0xff] }
 0xbff   :  { %662 = vmatpush.msra.mxu3 %v640_v44 }
 0xc02   :  { %v939_v37 = vpop.eup %938 }
 0xc03   :  { %v479_v38 = vmul.f32 %v939_v37, %v477_v36  ;;  %vm484_vm8 = vweird.f32 %v939_v37 }
 0xc04   :  { %vm485_vm10 = vmor %vm483_vm9, %vm484_vm8 }
 0xc05   :  { %v480_v41 = vsub.f32 1.0, %v479_v38 }
 0xc07   :  { %v481_v42 = vmul.f32 %v939_v37, %v480_v41 }
 0xc09   :  { %v482_v43 = vadd.f32 %v939_v37, %v481_v42 }
 0xc0b   :  { %v486_v46 = vsel %vm485_vm10, %v939_v37, %v482_v43  ;;  %v716_v43 = vld [vmem:[%s1301_s7 + $0x18] sm:$0xff] }
 0xc0c   :  { %v491_v49 = vsel %vm488_vm11, %v490_v47, %v486_v46  ;;  %733 = vmatpush.msra.mxu2 %v716_v43  ;;  %v639_v46 = vld [vmem:[%s1302_s4 + $0x10] sm:$0xff]  ;;  %v714_v47 = vld [vmem:[%s1301_s7 + $0x8] sm:$0xff] }
 0xc0d   :  { %v494_v51 = vmul.f32 %v491_v49, %v441_v23  ;;  %663 = vmatpush.msra.mxu3 %v639_v46 }
 0xc0e   :  { %734 = vmatpush.msra.mxu2 %v715_v45 }
 0xc10   :  { %735 = vmatpush.msra.mxu2 %v714_v47 }
 0xc52   :  { %v497_v48 = vpop.permute.xlu2 %496 }
 0xc53   :  { %v499_v50 = vmul.f32 %v497_v48, %v491_v49  ;;  %v638_v48 = vld [vmem:[%s1302_s4 + $0x8] sm:$0xff] }
 0xc54   :  { %664 = vmatpush.msra.mxu3 %v638_v48 }
 0xc55   :  { %501 = vrot.lane.b32.xlu0 %v499_v50, %s972_s3  ;;  %v637_v50 = vld [vmem:[%s1302_s4] sm:$0xff] }
 0xc56   :  { %665 = vmatpush.msra.mxu3 %v637_v50 }
 0xcc7   :  { %v502_v52 = vpop.permute.xlu0 %501 }
 0xcc8   :  { %v504_v53 = vadd.f32 %v502_v52, %v494_v51 }
 0xcca   :  { %940 = vtanh.f32 %v504_v53 }
 0xcd0   :  { %v941_v54 = vpop.eup %940 }
 0xcd1   :  { %507 = vrot.lane.b32.xlu1 %v941_v54, %s971_s17  ;;  %v673_v54 = vld [vmem:[%s1305_s6 + $0x18] sm:$0xff] }
 0xcd2   :  { %690 = vmatpush.msrb.mxu1 %v673_v54 }
 0xd43   :  { %v508_v55 = vpop.permute.xlu1 %507 }
 0xd44   :  { %v510_v56 = vmul.f32 %v508_v55, %v491_v49  ;;  %v713_v49 = vld [vmem:[%s1301_s7] sm:$0xff]  ;;  %v743_v55 = vld [vmem:[%s1304_s9 + $0x10] sm:$0xff] }
 0xd45   :  { %736 = vmatpush.msra.mxu2 %v713_v49 }
 0xd46   :  { %512 = vrot.lane.b32.xlu2 %v510_v56, %s972_s3  ;;  %v672_v56 = vld [vmem:[%s1305_s6 + $0x10] sm:$0xff] }
 0xd47   :  { %691 = vmatpush.msrb.mxu1 %v672_v56 }
 0xda0   :  { %v513_v57 = vpop.permute.xlu2 %512 }
 0xda1   :  { %873 = vmatmul.msk.f32.vlgmr.msra.gmra.mxu1 %vm134_vm5, %v513_v57  ;;  %v742_v57 = vld [vmem:[%s1304_s9 + $0x8] sm:$0xff] }
 0xe1e   :  { %v533_v59 = vpop.f32.mrf.mxu1 }
 0xe1f   :  { %v536_v60 = vadd.f32 %v533_v59, %v125_v58  ;;  %v671_v59 = vld [vmem:[%s1305_s6 + $0x8] sm:$0xff] }
 0xe20   :  { %692 = vmatpush.msrb.mxu1 %v671_v59 }
 0xe21   :  { %942 = vtanh.f32 %v536_v60  ;;  %v874_v62 = vmul.f32 -1.442695, %v536_v60  ;;  %v741_v60 = vld [vmem:[%s1304_s9] sm:$0xff] }
 0xe23   :  { %944 = vpow2.f32 %v874_v62  ;;  %v805_v62 = vld [vmem:[%s1307_s11 + $0x18] sm:$0xff] }
 0xe27   :  { %v943_v61 = vpop.eup %942 }
 0xe28   :  { %559 = vrot.lane.b32.xlu0 %v943_v61, %s971_s17  ;;  %v670_v61 = vld [vmem:[%s1305_s6] sm:$0xff] }
 0xe29   :  { %v945_v63 = vpop.eup %944  ;;  %693 = vmatpush.msrb.mxu1 %v670_v61 }
 0xe2a   :  { %v540_v0 = vadd.f32 1.0, %v945_v63  ;;  %v804_v63 = vld [vmem:[%s1307_s11 + $0x10] sm:$0xff] }
 0xe2b   :  { %822 = vmatpush.msra.mxu1 %v805_v62 }
 0xe2c   :  { %946 = vrcp.f32 %v540_v0  ;;  %v552_v6 = vand.u32 2147483648, %v540_v0  ;;  %vm546_vm13 = vweird.f32 %v540_v0  ;;  %v550_v39 = vand.u32 2147483647, %v540_v0 }
 0xe2d   :  { %823 = vmatpush.msra.mxu1 %v804_v63 }
 0xe2e   :  { %v553_v9 = vor.u32 1.1754944e-38, %v552_v6  ;;  %vm551_vm15 = vcmp.eq.f32.partialorder %v550_v39, 8.507059e+37 }
 0xe32   :  { %v947_v1 = vpop.eup %946 }
 0xe33   :  { %v542_v2 = vmul.f32 %v947_v1, %v540_v0  ;;  %vm547_vm12 = vweird.f32 %v947_v1  ;;  %v803_v0 = vld [vmem:[%s1307_s11 + $0x8] sm:$0xff] }
 0xe34   :  { %vm548_vm14 = vmor %vm546_vm13, %vm547_vm12  ;;  %824 = vmatpush.msra.mxu1 %v803_v0 }
 0xe35   :  { %v543_v3 = vsub.f32 1.0, %v542_v2  ;;  %v891_v2 = vld [vmem:[%s1303_s5] ss:$0 sm:$0xff] }
 0xe37   :  { %v544_v4 = vmul.f32 %v947_v1, %v543_v3  ;;  %v892_v3 = vld [vmem:[%s1306_s8] ss:$0 sm:$0xff] }
 0xe39   :  { %v545_v5 = vadd.f32 %v947_v1, %v544_v4 }
 0xe3b   :  { %v549_v7 = vsel %vm548_vm14, %v947_v1, %v545_v5  ;;  %v802_v1 = vld [vmem:[%s1307_s11] sm:$0xff] }
 0xe3c   :  { %v554_v11 = vsel %vm551_vm15, %v553_v9, %v549_v7  ;;  %825 = vmatpush.msra.mxu1 %v802_v1  ;;  %v674_v7 = vld [vmem:[%s1309_s13] sm:$0xff] }
 0xe3d   :  { %v557_v13 = vmul.f32 %v554_v11, %v504_v53  ;;  %v744_v53 = vld [vmem:[%s1304_s9 + $0x18] sm:$0xff] }
 0xe3e   :  { %761 = vmatpush.msrb.mxu3 %v744_v53 }
 0xe40   :  { %762 = vmatpush.msrb.mxu3 %v743_v55 }
 0xe42   :  { %763 = vmatpush.msrb.mxu3 %v742_v57 }
 0xe44   :  { %764 = vmatpush.msrb.mxu3 %v741_v60 }
 0xe9a   :  { %v560_v10 = vpop.permute.xlu0 %559 }
 0xe9b   :  { %v562_v12 = vmul.f32 %v560_v10, %v554_v11 }
 0xe9d   :  { %564 = vrot.lane.b32.xlu1 %v562_v12, %s972_s3 }
 0xf0f   :  { %v565_v14 = vpop.permute.xlu1 %564 }
 0xf10   :  { %v567_v15 = vadd.f32 %v565_v14, %v557_v13  ;;  %v745_v13 = vld [vmem:[%s1311_s14] sm:$0xff]  ;;  %s975_s14 = smov 20  }
 0xf12   :  { %948 = vtanh.f32 %v567_v15 }
 0xf18   :  { %v949_v16 = vpop.eup %948 }
 0xf19   :  { %570 = vrot.lane.b32.xlu2 %v949_v16, %s971_s17 }
 0xf73   :  { %v571_v17 = vpop.permute.xlu2 %570 }
 0xf74   :  { %v573_v18 = vmul.f32 %v571_v17, %v554_v11  ;;  %v769_v11 = vld [vmem:[%s1310_s10] sm:$0x3] }
 0xf75   :  { %v786_v14 = vperm.slane %v769_v11, 1 }
 0xf76   :  { %575 = vrot.lane.b32.xlu0 %v573_v18, %s972_s3 }
 0xfe8   :  { %v576_v19 = vpop.permute.xlu0 %575 }
 0xfe9   :  { %875 = vmatmul.msk.f32.vlgmr.msrb.gmra.mxu2 %vm134_vm5, %v576_v19 }
0x106c   :  { %v596_v21 = vpop.f32.mrf.mxu2 }
0x106d   :  { %v599_v22 = vadd.f32 %v596_v21, %v128_v20 }
0x106f   :  { %950 = vtanh.f32 %v599_v22  ;;  %v876_v24 = vmul.f32 -1.442695, %v599_v22  ;;  %v893_v22 = vld [vmem:[%s1308_s12] ss:$0 sm:$0xff]  ;;  %s974_s12 = smov 4  }
0x1071   :  { %952 = vpow2.f32 %v876_v24 }
0x1075   :  { %v951_v23 = vpop.eup %950 }
0x1076   :  { %622 = vrot.lane.b32.xlu1 %v951_v23, %s971_s17 }
0x1077   :  { %v953_v25 = vpop.eup %952 }
0x1078   :  { %v603_v26 = vadd.f32 1.0, %v953_v25 }
0x107a   :  { %954 = vrcp.f32 %v603_v26  ;;  %v615_v32 = vand.u32 2147483648, %v603_v26  ;;  %vm609_vm2 = vweird.f32 %v603_v26  ;;  %v613_v8 = vand.u32 2147483647, %v603_v26 }
0x107c   :  { %v616_v33 = vor.u32 1.1754944e-38, %v615_v32  ;;  %vm614_vm4 = vcmp.eq.f32.partialorder %v613_v8, 8.507059e+37 }
0x1080   :  { %v955_v27 = vpop.eup %954 }
0x1081   :  { %v605_v28 = vmul.f32 %v955_v27, %v603_v26  ;;  %vm610_vm1 = vweird.f32 %v955_v27 }
0x1082   :  { %vm611_vm3 = vmor %vm609_vm2, %vm610_vm1 }
0x1083   :  { %v606_v29 = vsub.f32 1.0, %v605_v28 }
0x1085   :  { %v607_v30 = vmul.f32 %v955_v27, %v606_v29 }
0x1087   :  { %v608_v31 = vadd.f32 %v955_v27, %v607_v30 }
0x1089   :  { %v612_v40 = vsel %vm611_vm3, %v955_v27, %v608_v31 }
0x108a   :  { %v617_v35 = vsel %vm614_vm4, %v616_v33, %v612_v40 }
0x108b   :  { %v620_v37 = vmul.f32 %v617_v35, %v567_v15  ;;  %v770_v15 = vperm.slane %v769_v11, 0 }
0x10e8   :  { %v623_v34 = vpop.permute.xlu1 %622 }
0x10e9   :  { %v625_v36 = vmul.f32 %v623_v34, %v617_v35 }
0x10eb   :  { %627 = vrot.lane.b32.xlu2 %v625_v36, %s972_s3 }
0x1145   :  { %v628_v38 = vpop.permute.xlu2 %627 }
0x1146   :  { %v630_v41 = vadd.f32 %v628_v38, %v620_v37 }
0x1148   :  { %956 = vtanh.f32 %v630_v41 }
0x114e   :  { %v957_v42 = vpop.eup %956 }
0x114f   :  { %633 = vrot.lane.b32.xlu0 %v957_v42, %s971_s17 }
0x11c1   :  { %v634_v51 = vpop.permute.xlu0 %633 }
0x11c2   :  { %v636_v52 = vmul.f32 %v634_v51, %v617_v35 }
0x11c4   :  { %646 = vrot.lane.b32.xlu1 %v636_v52, %s972_s3 }
0x1236   :  { %v647_v58 = vpop.permute.xlu1 %646 }
0x1237   :  { %877 = vmatmul.msk.f32.vlgmr.msra.gmra.mxu3 %vm134_vm5, %v647_v58  ;;  %879 = vmatmul.msk.f32.vlgmr.msra.gmra.mxu2 %vm134_vm5, %v647_v58 }
0x12ba   :  { %v667_v4 = vpop.f32.mrf.mxu3  ;;  %v738_v5 = vpop.f32.mrf.mxu2 }
0x12bb   :  { %v668_v6 = vadd.f32 %v891_v2, %v667_v4  ;;  %v739_v39 = vadd.f32 %v892_v3, %v738_v5 }
0x12bd   :  { %878 = vmatmul.msk.f32.vlgmr.msrb.gmra.mxu1 %vm134_vm5, %v668_v6  ;;  %880 = vmatmul.msk.f32.vlgmr.msrb.gmra.mxu3 %vm134_vm5, %v739_v39 }
0x12c5   :  { %881 = vmatmul.msk.f32.vlgmr.msra.gmra.mxu1 %vm134_vm5, %v647_v58  ;;  %vm845_vm5 = vcmask 162816  }
0x133a   :  { %v695_v9 = vpop.f32.mrf.mxu1 }
0x133b   :  { %v696_v10 = vadd.f32 %v695_v9, %v674_v7 }
0x133d   :  { %v699_v12 = vsel %vm698_vm6, %v696_v10, -inf }
0x133e   :  { %700 = vmax.xlane.f32.xlu1 %v699_v12 }
0x1340   :  { %v766_v16 = vpop.f32.mrf.mxu3 }
0x1341   :  { %v767_v17 = vadd.f32 %v766_v16, %v745_v13 }
0x1342   :  { %v827_v23 = vpop.f32.mrf.mxu1 }
0x1343   :  { %v787_v18 = vadd.f32 %v786_v14, %v767_v17  ;;  %v771_v19 = vadd.f32 %v770_v15, %v767_v17  ;;  %v828_v24 = vadd.f32 %v893_v22, %v827_v23 }
0x1345   :  { %v788_v20 = vsel %vm64_vm0, %v787_v18, -inf  ;;  %v772_v21 = vsel %vm64_vm0, %v771_v19, -inf }
0x1346   :  { %789 = vmax.xlane.f32.xlu0 %v788_v20  ;;  %773 = vmax.xlane.f32.xlu2 %v772_v21 }
0x1357   :  { %831 = vrot.lane.b32.xlu1 %v828_v24, %s973_s19 }
0x13b1   :  { %v701_v25 = vpop.xlane.xlu1 %700 }
0x13b2   :  { %v702_v26 = vsub.f32 %v696_v10, %v701_v25 }
0x13b4   :  { %v703_v27 = vmul.f32 1.442695, %v702_v26 }
0x13b6   :  { %958 = vpow2.f32 %v703_v27 }
0x13b9   :  { %v774_v28 = vpop.xlane.xlu2 %773  ;;  %v790_v29 = vpop.xlane.xlu0 %789 }
0x13ba   :  { %v775_v30 = vsub.f32 %v771_v19, %v774_v28  ;;  %v791_v8 = vsub.f32 %v787_v18, %v790_v29 }
0x13bc   :  { %v959_v31 = vpop.eup %958  ;;  %v776_v32 = vmul.f32 1.442695, %v775_v30  ;;  %v792_v33 = vmul.f32 1.442695, %v791_v8 }
0x13bd   :  { %v705_v40 = vsel %vm698_vm6, %v959_v31, 0.0 }
0x13be   :  { %706 = vadd.xlane.f32.xlu0 %v705_v40  ;;  %960 = vpow2.f32 %v776_v32 }
0x13bf   :  { %962 = vpow2.f32 %v792_v33 }
0x13c4   :  { %v961_v34 = vpop.eup %960 }
0x13c5   :  { %v778_v35 = vsel %vm64_vm0, %v961_v34, 0.0  ;;  %v963_v36 = vpop.eup %962 }
0x13c6   :  { %779 = vadd.xlane.f32.xlu2 %v778_v35  ;;  %v794_v37 = vsel %vm64_vm0, %v963_v36, 0.0  ;;  %vm843_vm0 = vcmask 31744  }
0x13c9   :  { %v832_v59 = vpop.permute.xlu1 %831 }
0x13ce   :  { %795 = vadd.xlane.f32.xlu2 %v794_v37 }
0x1431   :  { %v707_v52 = vpop.xlane.xlu0 %706 }
0x1439   :  { %v780_v38 = vpop.xlane.xlu2 %779 }
0x143a   :  { %964 = vrcp.f32 %v780_v38 }
0x1440   :  { %v965_v41 = vpop.eup %964 }
0x1441   :  { %v782_v42 = vmul.f32 %v965_v41, %v780_v38  ;;  %v796_v43 = vpop.xlane.xlu2 %795 }
0x1442   :  { %966 = vrcp.f32 %v796_v43 }
0x1443   :  { %v783_v44 = vsub.f32 2.0, %v782_v42  ;;  %968 = vrcp.f32 %v707_v52 }
0x1445   :  { %v784_v45 = vmul.f32 %v965_v41, %v783_v44 }
0x1447   :  { %v785_v46 = vmul.f32 %v961_v34, %v784_v45 }
0x1448   :  { %v967_v47 = vpop.eup %966 }
0x1449   :  { %v798_v48 = vmul.f32 %v967_v47, %v796_v43  ;;  %835 = vrot.lane.b32.xlu2 %v785_v46, %s974_s12  ;;  %v969_v53 = vpop.eup %968 }
0x144a   :  { %v709_v54 = vmul.f32 %v969_v53, %v707_v52 }
0x144b   :  { %v799_v49 = vsub.f32 2.0, %v798_v48 }
0x144c   :  { %v710_v55 = vsub.f32 2.0, %v709_v54 }
0x144d   :  { %v800_v50 = vmul.f32 %v967_v47, %v799_v49 }
0x144e   :  { %v711_v56 = vmul.f32 %v969_v53, %v710_v55 }
0x144f   :  { %v801_v51 = vmul.f32 %v963_v36, %v800_v50 }
0x1450   :  { %v712_v57 = vmul.f32 %v959_v31, %v711_v56 }
0x1451   :  { %839 = vrot.lane.b32.xlu0 %v801_v51, %s975_s14 }
0x1452   :  { %v842_v60 = vsel %vm698_vm6, %v712_v57, %v832_v59 }
0x14a3   :  { %v836_v58 = vpop.permute.xlu2 %835 }
0x14a4   :  { %v844_v61 = vsel %vm843_vm0, %v842_v60, %v836_v58 }
0x14c3   :  { %v840_v62 = vpop.permute.xlu0 %839 }
0x14c4   :  { %v846_v63 = vsel %vm845_vm5, %v844_v61, %v840_v62 }
0x14c5   :  { %v848_v0 = vsel %vm847_vm7, %v846_v63, 0.0 }
0x14c6   :  { %849 = vst [vmem:[%s1312_s15] sm:$0xff] %v848_v0 }

</bundles_post_ra>
